<compile_context>
chip_gen: v7x
topology: tpu7x:2x2x1
jax: 0.10.0
libtpu: 0.0.40
codegen_flags: <defaults>
</compile_context>

<pallas_src>
import math

import jax
import jax.numpy as jnp
from jax.experimental import pallas as pl
from jax.experimental.pallas import tpu as pltpu


# -----------------------------------------------------------------------------
# Kernel body: broadcast-add of a resident PE tile onto a data tile.
# -----------------------------------------------------------------------------
def _pe_add_kernel(x_ref, pe_ref, o_ref):
    acc = x_ref[...] + pe_ref[...]
    if jnp.issubdtype(o_ref.dtype, jnp.integer):
        acc = jnp.round(acc)
    o_ref[...] = acc.astype(o_ref.dtype)


# -----------------------------------------------------------------------------
# Tiling helpers
# -----------------------------------------------------------------------------
def _round_up(x: int, m: int) -> int:
    return ((x + m - 1) // m) * m


def _sublane(dtype_bytes: int) -> int:
    # sublane packing: 8 rows/vreg for 32-bit, 16 for 16-bit, 32 for 8-bit
    return 8 if dtype_bytes >= 4 else (16 if dtype_bytes == 2 else 32)


def _choose_tiles(n_rows: int, lane: int, dtype_bytes: int,
                  target_bytes: int) -> tuple[int, int]:
    """Pick (tile_rows, tile_lane): ~target_bytes per block, sublane-aligned."""
    sub = _sublane(dtype_bytes)

    # Very wide rows: even a sublane-high full-width block would blow the
    # budget -> tile the lane axis too (matters most on v7x's 64 MiB VMEM).
    if lane > 128 and sub * lane * dtype_bytes > target_bytes:
        tile_lane = max(128, (target_bytes // (sub * dtype_bytes)) // 128 * 128)
        return sub, tile_lane

    tile_lane = lane
    t = max(sub, target_bytes // max(1, lane * dtype_bytes))
    t = _round_up(t, sub)
    # Keep the (megacore-)parallel row axis at >= 2 grid steps when possible,
    # so both v7x TensorCores get work.
    t = min(t, _round_up(pl.cdiv(n_rows, 2), sub))
    return max(t, sub), tile_lane


# -----------------------------------------------------------------------------
# pallas_call wrapper on a 2-D (rows, lane) layout
# -----------------------------------------------------------------------------
def _pe_add_pallas(x2: jax.Array, pe_row: jax.Array,
                   target_block_bytes: int, donate_input: bool) -> jax.Array:
    R, L = x2.shape
    dtype_bytes = jnp.dtype(x2.dtype).itemsize
    pe_bytes = jnp.dtype(pe_row.dtype).itemsize

    tile_rows, tile_lane = _choose_tiles(R, L, dtype_bytes, target_block_bytes)
    grid = (pl.cdiv(R, tile_rows), pl.cdiv(L, tile_lane))

    block_bytes = tile_rows * tile_lane * dtype_bytes
    vmem_need = (4 * block_bytes                 # double-buffered in + out
                 + 2 * tile_lane * pe_bytes      # resident PE tile
                 + (2 << 20))                    # slack
    vmem_limit = int(max(vmem_need, 32 << 20))   # always <= v7x 64 MiB physical

    cost = pl.CostEstimate(
        flops=R * L,
        transcendentals=0,
        bytes_accessed=2 * R * L * dtype_bytes + L * pe_bytes)

    return pl.pallas_call(
        _pe_add_kernel,
        out_shape=jax.ShapeDtypeStruct((R, L), x2.dtype),
        grid_spec=pltpu.PrefetchScalarGridSpec(
            num_scalar_prefetch=0,
            grid=grid,
            in_specs=[
                pl.BlockSpec((tile_rows, tile_lane), lambda i, j: (i, j)),
                # PE tile: constant block index along the row axis -> stays
                # VMEM-resident (re-fetched only when the lane block changes).
                pl.BlockSpec((1, tile_lane), lambda i, j: (0, j)),
            ],
            out_specs=pl.BlockSpec((tile_rows, tile_lane), lambda i, j: (i, j)),
        ),
        compiler_params=pltpu.CompilerParams(
            dimension_semantics=("parallel", "arbitrary"),
            vmem_limit_bytes=vmem_limit),
        cost_estimate=cost,
        input_output_aliases=({0: 0} if donate_input else {}),
    )(x2, pe_row)


# -----------------------------------------------------------------------------
# Public entry point
# -----------------------------------------------------------------------------
def _pe_vector(D: int, offset: int, dtype) -> jax.Array:
    d = jnp.arange(D, dtype=jnp.float32)
    position = d + jnp.float32(offset)
    exponent = 2.0 * jnp.floor(position / 2.0) / jnp.float32(D)
    angle = position / jnp.power(jnp.float32(10000.0), exponent)
    pe = jnp.where(jnp.arange(D) % 2 == 0, jnp.cos(angle), jnp.sin(angle))
    return pe.astype(dtype)


def sinusoidal_positional_encoding(x: jax.Array, offset: int = 0, *,
                                   target_block_bytes: int = 4 << 20,
                                   donate_input: bool = False) -> jax.Array:
    """Adds the sinusoidal positional encoding (reference semantics) to x (..., D)."""
    orig_shape = x.shape
    D = orig_shape[-1]
    n = math.prod(orig_shape[:-1]) if len(orig_shape) > 1 else 1
    if n == 0 or D == 0:
        return x

    # PE operand dtype: native add for floating inputs (bf16 VALU on v6e/v7x);
    # f32 + round for integer inputs.
    pe_dtype = x.dtype if jnp.issubdtype(x.dtype, jnp.floating) else jnp.float32
    pe = _pe_vector(D, offset, pe_dtype)                    # (D,)

    x2 = x.reshape(n, D)

    # Lane-densify: fold k rows so the lane width is lcm(D, 128) (a multiple
    # of 128); fold == 1 when D is already 128-aligned.
    fold = 128 // math.gcd(D, 128)
    if fold > n:
        fold = 1
    n_bulk = (n // fold) * fold
    n_tail = n - n_bulk

    lane = D * fold
    pe_row = jnp.tile(pe, fold).reshape(1, lane)            # (1, lane)

    if n_tail == 0:
        bulk = x2.reshape(n // fold, lane)                  # row-major: free reinterpret
        out = _pe_add_pallas(bulk, pe_row, target_block_bytes, donate_input)
        return out.reshape(orig_shape)

    # Ragged tail (< fold rows): keep the bulk on the full-width vst path,
    # finish the tiny remainder with a plain JAX add.
    bulk = jax.lax.slice_in_dim(x2, 0, n_bulk, axis=0).reshape(n_bulk // fold, lane)
    out_bulk = _pe_add_pallas(bulk, pe_row, target_block_bytes, donate_input)
    out_bulk = out_bulk.reshape(n_bulk, D)

    tail = jax.lax.slice_in_dim(x2, n_bulk, n, axis=0)
    acc = tail + pe[None, :]
    if jnp.issubdtype(x.dtype, jnp.integer):
        acc = jnp.round(acc)
    out_tail = acc.astype(x.dtype)
    # TODO(synk): the concatenate costs one extra pass over the bulk rows; a
    # donated-output scatter would avoid it but needs cross-call aliasing.
    return jnp.concatenate([out_bulk, out_tail], axis=0).reshape(orig_shape)


# -----------------------------------------------------------------------------
# Pure-JAX reference (reproduces the PyTorch forward) for verification
# -----------------------------------------------------------------------------
def _reference(x: jax.Array, offset: int = 0) -> jax.Array:
    shape = x.shape
    d = shape[-1]
    x2 = x.reshape(-1, d).astype(jnp.float32)
    position = jnp.arange(0, d, dtype=jnp.float32)[None, :] + offset
    angle = position / 10000.0 ** (2.0 * jnp.floor(position / 2.0) / d)
    pe = jnp.where(jnp.arange(d)[None, :] % 2 == 0,
                   jnp.cos(angle), jnp.sin(angle))
    return (x2 + pe).reshape(shape)


if __name__ == "__main__":
    key = jax.random.PRNGKey(0)

    # 1) Primary: D=32 -> fold=4, lane width 128, single folded kernel.
    x = jax.random.normal(key, (2, 8, 32), dtype=jnp.float32)
    y = jax.block_until_ready(sinusoidal_positional_encoding(x, offset=3))
    y_ref = _reference(x, offset=3)
    assert y.shape == x.shape
    assert jnp.allclose(y, y_ref, atol=1e-5, rtol=1e-5), (
        float(jnp.max(jnp.abs(y - y_ref))))

    # 2) Ragged rows: N=15, fold=4 -> bulk(12 rows) folded kernel + tiny tail.
    x2 = jax.random.normal(jax.random.PRNGKey(1), (3, 5, 32), dtype=jnp.float32)
    y2 = jax.block_until_ready(sinusoidal_positional_encoding(x2, offset=0))
    y2_ref = _reference(x2, offset=0)
    assert jnp.allclose(y2, y2_ref, atol=1e-5, rtol=1e-5), (
        float(jnp.max(jnp.abs(y2 - y2_ref))))

    # 3) gcd-based fold: D=96 -> fold=4, lane width 384.
    x3 = jax.random.normal(jax.random.PRNGKey(2), (2, 8, 96), dtype=jnp.float32)
    y3 = jax.block_until_ready(sinusoidal_positional_encoding(x3, offset=1))
    y3_ref = _reference(x3, offset=1)
    assert jnp.allclose(y3, y3_ref, atol=1e-5, rtol=1e-5), (
        float(jnp.max(jnp.abs(y3 - y3_ref))))

    # 4) bf16 path: native bf16 add (no f32 promote/cast round trip).
    x4 = jax.random.normal(jax.random.PRNGKey(3), (2, 8, 64), dtype=jnp.bfloat16)
    y4 = jax.block_until_ready(sinusoidal_positional_encoding(x4, offset=2))
    y4_ref = _reference(x4, offset=2)
    assert jnp.allclose(y4.astype(jnp.float32), y4_ref, atol=5e-2, rtol=5e-2), (
        float(jnp.max(jnp.abs(y4.astype(jnp.float32) - y4_ref))))

    print("KERNEL_OK")
</pallas_src>

<mosaic_0001>
module attributes {stable_mosaic.version = 11 : i64} {
  func.func @_pe_add_kernel(%arg0: i32, %arg1: i32, %arg2: memref<8x128xf32, #tpu.memory_space<vmem>>, %arg3: memref<1x128xf32, #tpu.memory_space<vmem>>, %arg4: memref<8x128xf32, #tpu.memory_space<vmem>>) attributes {dimension_semantics = [#tpu.dimension_semantics<parallel>, #tpu.dimension_semantics<arbitrary>], iteration_bounds = array<i64: 1, 1>, scalar_prefetch = 0 : i64, scratch_operands = 0 : i64, tpu.core_type = #tpu.core_type<tc>, window_params = [{transform_indices = @transform_0, window_bounds = array<i64: 8, 128>}, {transform_indices = @transform_1, window_bounds = array<i64: 1, 128>}, {transform_indices = @transform_2, window_bounds = array<i64: 8, 128>}]} {
    %c0 = arith.constant 0 : index
    %c0_0 = arith.constant 0 : index
    %0 = vector.load %arg2[%c0, %c0_0] : memref<8x128xf32, #tpu.memory_space<vmem>>, vector<8x128xf32>
    %c0_1 = arith.constant 0 : index
    %c0_2 = arith.constant 0 : index
    %1 = vector.load %arg3[%c0_1, %c0_2] : memref<1x128xf32, #tpu.memory_space<vmem>>, vector<1x128xf32>
    %2 = vector.broadcast %1 : vector<1x128xf32> to vector<8x128xf32>
    %3 = arith.addf %0, %2 : vector<8x128xf32>
    %c0_3 = arith.constant 0 : index
    %c0_4 = arith.constant 0 : index
    %4 = vector.load %arg4[%c0_3, %c0_4] : memref<8x128xf32, #tpu.memory_space<vmem>>, vector<8x128xf32>
    tpu.vector_store %arg4[%c0_3, %c0_4], %3 {strides = array<i32>} : memref<8x128xf32, #tpu.memory_space<vmem>>, vector<8x128xf32>,
    return
  }
  func.func @transform_0(%arg0: i32, %arg1: i32) -> (i32, i32) {
    %c0_i32 = arith.constant 0 : i32
    return %arg0, %arg1 : i32, i32
  }
  func.func @transform_1(%arg0: i32, %arg1: i32) -> (i32, i32) {
    %c0_i32 = arith.constant 0 : i32
    %c0_i32_0 = arith.constant 0 : i32
    return %c0_i32, %arg1 : i32, i32
  }
  func.func @transform_2(%arg0: i32, %arg1: i32) -> (i32, i32) {
    %c0_i32 = arith.constant 0 : i32
    return %arg0, %arg1 : i32, i32
  }
}

</mosaic_0001>

<bundles_post_ra>
// kernel: tpu_custom_call.1
= control target key start
LH: loop header
LB: loop body
LE: loop exit
PB: predicated region body
PF: predicated region fallthrough
CT: control target
= control target key end

     0   :  { %7 = vsyncpa [#allocation3], 0  ;;  %s152_s0 = inlined_call_operand.hbm [shape: f32[4,128], index: 0, kind: input, shape index: {}]   ;;  %s153_s1 = inlined_call_operand.vmem [shape: f32[1,128], index: 1, kind: input, shape index: {}]   ;;  %s154_s2 = inlined_call_operand.hbm [shape: f32[4,128], index: 2, kind: output, shape index: {}]  }
   0x1   :  { %8 = vsyncpa [#allocation4], 0 }
   0x2   :  { %13 = vsyncadd [#allocation3], 64  ;;  %s106_s9 = smov [#allocation2]   ;;  %s58_s13 = scalar_lea.hbm %s152_s0, 64 }
   0x3   :  { %s14_s10 = sshll.u32 %s106_s9, 4  ;;  %p59_p0 = scmp.ne.s32.totalorder %s152_s0, %s58_s13  ;;  %s15_s10 = int_to_ptr.vmem [resolvable:$true] %s14_s10 }
   0x4   :  { %p62_p1 = scmp.lt.u32.totalorder %s58_s13, %s152_s0 }
   0x6   :  { %p64_p2 = pnand %p62_p1, %p59_p0 }
   0x8   :  { %67 = shalt.err (!%p64_p2)
}
   0x9   :  { %s68_s18 = scalar_lea.vmem %s15_s10, 64  ;;  %s72_s19 = scalar_lea.vmem %s15_s10, 128 }
   0xa   :  { %p69_p3 = scmp.ne.s32.totalorder %s15_s10, %s68_s18  ;;  %p73_p4 = scmp.lt.s32.totalorder %s15_s10, %s15_s10 }
   0xb   :  { %p74_p5 = scmp.lt.s32.totalorder %s72_s19, %s68_s18 }
   0xd   :  { %p75_p6 = por %p74_p5, %p73_p4 }
   0xf   :  { %p76_p7 = pnand %p75_p6, %p69_p3 }
  0x11   :  { %79 = shalt.err (!%p76_p7)
}
  0x12   :  { %s107_s20 = smov 64   ;;  %s108_s21 = smov 4  }
  0x13   :  { %20 = dma.hbm_to_vmem [thread:$0]  %s152_s0, 64, %s15_s10, [#allocation3], %s107_s20, %s107_s20, %s108_s21  }
  0x14   :  { %102 = dma.done.wait [#allocation3], 128  }
  0x15   :  { %103 = vsyncadd [#allocation3], 4294967168  ;;  %v26_v0 = vld [vmem:[#allocation2] sm:$0xff] }
  0x16   :  { %v53_v1 = vld [vmem:[%s153_s1] ss:$0 sm:$0xff] }
  0x17   :  { %v34_v2 = vadd.f32 %v53_v1, %v26_v0 }
  0x19   :  { %35 = vst [vmem:[#allocation5] sm:$0xff] %v34_v2 }
  0x1a   :  { %40 = vsyncadd [#allocation4], 64  ;;  %s109_s26 = smov [#allocation5]  }
  0x1b   :  { %s41_s27 = sshll.u32 %s109_s26, 4  ;;  %s42_s27 = int_to_ptr.vmem [resolvable:$true] %s41_s27 }
  0x1c   :  { %s80_s28 = scalar_lea.vmem %s42_s27, 64  ;;  %s84_s29 = scalar_lea.vmem %s42_s27, 128 }
  0x1d   :  { %p81_p8 = scmp.ne.s32.totalorder %s42_s27, %s80_s28  ;;  %p85_p9 = scmp.lt.s32.totalorder %s42_s27, %s42_s27 }
  0x1e   :  { %p86_p10 = scmp.lt.s32.totalorder %s84_s29, %s80_s28 }
  0x20   :  { %p87_p11 = por %p86_p10, %p85_p9 }
  0x22   :  { %p88_p12 = pnand %p87_p11, %p81_p8 }
  0x24   :  { %91 = shalt.err (!%p88_p12)
}
  0x25   :  { %s92_s3 = scalar_lea.hbm %s154_s2, 64 }
  0x26   :  { %p93_p13 = scmp.ne.s32.totalorder %s154_s2, %s92_s3  ;;  %p96_p0 = scmp.lt.u32.totalorder %s92_s3, %s154_s2 }
  0x28   :  { %p98_p1 = pnand %p96_p0, %p93_p13 }
  0x2a   :  { %101 = shalt.err (!%p98_p1)
}
  0x2b   :  { %47 = dma.vmem_to_hbm [thread:$0]  %s42_s27, 64, %s154_s2, [#allocation4], %s107_s20, %s107_s20, %s108_s21  }
  0x2c   :  { %104 = dma.done.wait [#allocation4], 128  }
  0x2d   :  { %105 = vsyncadd [#allocation4], 4294967168 }
  0x2e   :  { %51 = vsyncpa [#allocation3], 1 }
  0x2f   :  { %52 = vsyncpa [#allocation4], 1 }

</bundles_post_ra>
